<compile_context>
chip_gen: v7x
topology: tpu7x:2x2x1
jax: 0.10.0
libtpu: 0.0.40
codegen_flags: <defaults>
</compile_context>

<pallas_src>
import jax
import jax.numpy as jnp
from jax.experimental import pallas as pl
from jax.experimental.pallas import tpu as pltpu

_LANE = 128
_TARGET_BLOCK_BYTES = 4 * 1024 * 1024   # ~4 MiB per operand block
_VMEM_LIMIT_BYTES = 48 * 1024 * 1024    # 3 operands x 2 buffers x 4 MiB = 24 MiB used


def _lan_kernel(x_ref, phi_ref, o_ref):
    # Elementwise hot path; kernel is HBM-DMA-bound, compute rides for free.
    o_ref[...] = x_ref[...] + jnp.tanh(phi_ref[...])


def _choose_cw(total):
    """Largest lane width in {1024, 512, 256, 128} that divides `total` (None if none)."""
    for cw in (1024, 512, 256, 128):
        if total % cw == 0:
            return cw
    return None


def _choose_tr(rows, cw, itemsize):
    """Rows per block: ~4 MiB target, dtype-aware sublane multiple, >=2 grid steps."""
    s = max(8, 32 // itemsize)           # 8 (f32), 16 (bf16), 32 (int8/fp8)
    tr = (_TARGET_BLOCK_BYTES // (cw * itemsize)) // s * s
    tr = max(s, tr)
    if rows <= s:
        # Single tiny block; tr == full array dim along this axis is allowed.
        return rows
    # Cap at ~rows/2 (rounded up to a sublane multiple) so there are at least two
    # grid steps whenever there is more than one minimal tile -> both v7x
    # TensorCores get work under dimension_semantics=("parallel",).
    half = -(-rows // 2)
    half = -(-half // s) * s
    return min(tr, half)


def lan_forward(x, phi):
    """Forward of Lan: x + tanh(phi). phi must have the same shape as x."""
    assert x.shape == phi.shape, "phi must have the same shape as x"
    orig_shape = x.shape
    total = x.size
    itemsize = jnp.dtype(x.dtype).itemsize

    x_flat = x.reshape(-1)
    p_flat = phi.reshape(-1)

    cw = _choose_cw(total)
    pad = 0
    if cw is None:
        # Rare fallback: total not a multiple of 128. Pad by <128 elements so the
        # flat -> 2-D reshape is valid; everything else stays on the fast path.
        cw = _LANE
        pad = (-total) % _LANE
        x_flat = jnp.pad(x_flat, (0, pad))
        p_flat = jnp.pad(p_flat, (0, pad))

    rows = (total + pad) // cw
    tr = _choose_tr(rows, cw, itemsize)
    grid = (pl.cdiv(rows, tr),)          # ragged last block handled by Pallas masking

    x2 = x_flat.reshape(rows, cw)        # zero-copy view of the flat data
    p2 = p_flat.reshape(rows, cw)

    out2 = pl.pallas_call(
        _lan_kernel,
        out_shape=jax.ShapeDtypeStruct((rows, cw), x.dtype),
        grid_spec=pltpu.PrefetchScalarGridSpec(
            num_scalar_prefetch=0,
            grid=grid,
            in_specs=[
                pl.BlockSpec((tr, cw), lambda i: (i, 0)),
                pl.BlockSpec((tr, cw), lambda i: (i, 0)),
            ],
            out_specs=pl.BlockSpec((tr, cw), lambda i: (i, 0)),
        ),
        compiler_params=pltpu.CompilerParams(
            dimension_semantics=("parallel",),
            vmem_limit_bytes=_VMEM_LIMIT_BYTES,
        ),
    )(x2, p2)

    out_flat = out2.reshape(-1)
    if pad:
        out_flat = out_flat[:total]
    return out_flat.reshape(orig_shape)


if __name__ == "__main__":
    key = jax.random.PRNGKey(0)
    k1, k2, k3, k4, k5, k6 = jax.random.split(key, 6)

    # Main case: small NCHW input consistent with the module (phi shape == x shape).
    # nn.Parameter init is zeros, but we test with a random phi so tanh is actually
    # exercised (per correctness review). self.T / self.alpha are unused in forward().
    B, C, H, W = 2, 4, 16, 16
    x = jax.random.normal(k1, (B, C, H, W), dtype=jnp.float32)
    phi = jax.random.normal(k2, (B, C, H, W), dtype=jnp.float32)
    out = jax.block_until_ready(lan_forward(x, phi))
    ref = x + jnp.tanh(phi)
    assert out.shape == x.shape
    assert jnp.allclose(out, ref, atol=1e-5, rtol=1e-5), "mismatch vs reference (main)"

    # Extra case: exercises a multi-step grid with a masked ragged last block
    # (total = 3840 -> cw = 256, rows = 15, tr = 8, grid = 2).
    xb = jax.random.normal(k3, (2, 3, 40, 16), dtype=jnp.float32)
    pb = jax.random.normal(k4, (2, 3, 40, 16), dtype=jnp.float32)
    outb = jax.block_until_ready(lan_forward(xb, pb))
    assert jnp.allclose(outb, xb + jnp.tanh(pb), atol=1e-5, rtol=1e-5), "mismatch (ragged)"

    # Extra case: exercises the (rare) non-multiple-of-128 fallback path (total = 105).
    xc = jax.random.normal(k5, (3, 5, 7), dtype=jnp.float32)
    pc = jax.random.normal(k6, (3, 5, 7), dtype=jnp.float32)
    outc = jax.block_until_ready(lan_forward(xc, pc))
    assert jnp.allclose(outc, xc + jnp.tanh(pc), atol=1e-5, rtol=1e-5), "mismatch (fallback)"

    print("KERNEL_OK")
</pallas_src>

<mosaic_0001>
module attributes {stable_mosaic.version = 11 : i64} {
  func.func @_lan_kernel(%arg0: i32, %arg1: memref<2x1024xf32, #tpu.memory_space<vmem>>, %arg2: memref<2x1024xf32, #tpu.memory_space<vmem>>, %arg3: memref<2x1024xf32, #tpu.memory_space<vmem>>) attributes {dimension_semantics = [#tpu.dimension_semantics<parallel>], iteration_bounds = array<i64: 1>, scalar_prefetch = 0 : i64, scratch_operands = 0 : i64, tpu.core_type = #tpu.core_type<tc>, window_params = [{transform_indices = @transform_0, window_bounds = array<i64: 2, 1024>}, {transform_indices = @transform_1, window_bounds = array<i64: 2, 1024>}, {transform_indices = @transform_2, window_bounds = array<i64: 2, 1024>}]} {
    %c0 = arith.constant 0 : index
    %c0_0 = arith.constant 0 : index
    %0 = vector.load %arg1[%c0, %c0_0] : memref<2x1024xf32, #tpu.memory_space<vmem>>, vector<2x1024xf32>
    %c0_1 = arith.constant 0 : index
    %c0_2 = arith.constant 0 : index
    %1 = vector.load %arg2[%c0_1, %c0_2] : memref<2x1024xf32, #tpu.memory_space<vmem>>, vector<2x1024xf32>
    %2 = math.tanh %1 : vector<2x1024xf32>
    %3 = arith.addf %0, %2 : vector<2x1024xf32>
    %c0_3 = arith.constant 0 : index
    %c0_4 = arith.constant 0 : index
    %4 = vector.load %arg3[%c0_3, %c0_4] : memref<2x1024xf32, #tpu.memory_space<vmem>>, vector<2x1024xf32>
    tpu.vector_store %arg3[%c0_3, %c0_4], %3 {strides = array<i32>} : memref<2x1024xf32, #tpu.memory_space<vmem>>, vector<2x1024xf32>,
    return
  }
  func.func @transform_0(%arg0: i32) -> (i32, i32) {
    %c0_i32 = arith.constant 0 : i32
    %c0_i32_0 = arith.constant 0 : i32
    return %arg0, %c0_i32 : i32, i32
  }
  func.func @transform_1(%arg0: i32) -> (i32, i32) {
    %c0_i32 = arith.constant 0 : i32
    %c0_i32_0 = arith.constant 0 : i32
    return %arg0, %c0_i32 : i32, i32
  }
  func.func @transform_2(%arg0: i32) -> (i32, i32) {
    %c0_i32 = arith.constant 0 : i32
    %c0_i32_0 = arith.constant 0 : i32
    return %arg0, %c0_i32 : i32, i32
  }
}

</mosaic_0001>

<bundles_post_ra>
// kernel: tpu_custom_call.1
= control target key start
LH: loop header
LB: loop body
LE: loop exit
PB: predicated region body
PF: predicated region fallthrough
CT: control target
= control target key end

     0   :  { %7 = vsyncpa [#allocation3], 0  ;;  %s195_s0 = inlined_call_operand.hbm [shape: f32[2,1024], index: 0, kind: input, shape index: {}]   ;;  %s196_s1 = inlined_call_operand.hbm [shape: f32[2,1024], index: 1, kind: input, shape index: {}]   ;;  %s197_s2 = inlined_call_operand.hbm [shape: f32[2,1024], index: 2, kind: output, shape index: {}]  }
   0x1   :  { %8 = vsyncpa [#allocation6], 0 }
   0x2   :  { %9 = vsyncpa [#allocation4], 0  ;;  %s141_s9 = smov [#allocation2]   ;;  %s142_s11 = smov [#allocation5]  }
   0x3   :  { %s16_s10 = sshll.u32 %s141_s9, 4  ;;  %s26_s12 = sshll.u32 %s142_s11, 4  ;;  %s17_s10 = int_to_ptr.vmem [resolvable:$true] %s16_s10  ;;  %s27_s12 = int_to_ptr.vmem [resolvable:$true] %s26_s12 }
   0x4   :  { %s69_s15 = scalar_lea.hbm %s195_s0, 256 }
   0x5   :  { %p70_p0 = scmp.ne.s32.totalorder %s195_s0, %s69_s15  ;;  %p73_p1 = scmp.lt.u32.totalorder %s69_s15, %s195_s0 }
   0x7   :  { %p75_p2 = pnand %p73_p1, %p70_p0 }
   0x9   :  { %78 = shalt.err (!%p75_p2)
}
   0xa   :  { %s79_s20 = scalar_lea.vmem %s17_s10, 256  ;;  %p84_p4 = scmp.lt.s32.totalorder %s17_s10, %s17_s10 }
   0xb   :  { %p80_p3 = scmp.ne.s32.totalorder %s17_s10, %s79_s20  ;;  %p85_p5 = scmp.lt.s32.totalorder %s79_s20, %s79_s20 }
   0xd   :  { %p86_p6 = por %p85_p5, %p84_p4 }
   0xf   :  { %p87_p7 = pnand %p86_p6, %p80_p3 }
  0x11   :  { %90 = shalt.err (!%p87_p7)
}
  0x12   :  { %19 = dma.hbm_to_vmem [thread:$0]  %s195_s0, 256, %s17_s10, [#allocation3]  }
  0x13   :  { %s91_s25 = scalar_lea.hbm %s196_s1, 256 }
  0x14   :  { %p92_p8 = scmp.ne.s32.totalorder %s196_s1, %s91_s25  ;;  %p95_p9 = scmp.lt.u32.totalorder %s91_s25, %s196_s1 }
  0x16   :  { %p97_p10 = pnand %p95_p9, %p92_p8 }
  0x18   :  { %100 = shalt.err (!%p97_p10)
}
  0x19   :  { %s101_s30 = scalar_lea.vmem %s27_s12, 256  ;;  %p106_p12 = scmp.lt.s32.totalorder %s27_s12, %s27_s12 }
  0x1a   :  { %p102_p11 = scmp.ne.s32.totalorder %s27_s12, %s101_s30  ;;  %p107_p13 = scmp.lt.s32.totalorder %s101_s30, %s101_s30 }
  0x1c   :  { %p108_p0 = por %p107_p13, %p106_p12 }
  0x1e   :  { %p109_p1 = pnand %p108_p0, %p102_p11 }
  0x20   :  { %112 = shalt.err (!%p109_p1)
}
  0x21   :  { %29 = dma.hbm_to_vmem [thread:$0]  %s196_s1, 256, %s27_s12, [#allocation6]  }
  0x22   :  { %135 = dma.done.wait [#allocation3], 256  }
  0x23   :  { %136 = vsyncadd [#allocation3], 4294967040 }
  0x24   :  { %137 = dma.done.wait [#allocation6], 256  }
  0x25   :  { %138 = vsyncadd [#allocation6], 4294967040  ;;  %v38_v0 = vld [vmem:[#allocation5] sm:$0xff]  ;;  %v39_v1 = vld [vmem:[#allocation5 + $0x8] sm:$0xff]  ;;  %s143_s4 = smov [#allocation7]  }
  0x26   :  { %65 = vtanh.f32 %v38_v0  ;;  %v36_v2 = vld [vmem:[#allocation2] sm:$0xff]  ;;  %v37_v3 = vld [vmem:[#allocation2 + $0x8] sm:$0xff]  ;;  %s52_s5 = sshll.u32 %s143_s4, 4  ;;  %s53_s5 = int_to_ptr.vmem [resolvable:$true] %s52_s5 }
  0x27   :  { %67 = vtanh.f32 %v39_v1  ;;  %s113_s1 = scalar_lea.vmem %s53_s5, 256  ;;  %p118_p3 = scmp.lt.s32.totalorder %s53_s5, %s53_s5 }
  0x28   :  { %p114_p2 = scmp.ne.s32.totalorder %s53_s5, %s113_s1  ;;  %p119_p4 = scmp.lt.s32.totalorder %s113_s1, %s113_s1 }
  0x2a   :  { %p120_p5 = por %p119_p4, %p118_p3 }
  0x2c   :  { %p121_p6 = pnand %p120_p5, %p114_p2 }
  0x30   :  { %v66_v4 = vpop.eup %65 }
  0x31   :  { %v68_v5 = vpop.eup %67  ;;  %v42_v6 = vadd.f32 %v66_v4, %v36_v2 }
  0x32   :  { %v43_v7 = vadd.f32 %v68_v5, %v37_v3 }
  0x33   :  { %44 = vst [vmem:[#allocation7] sm:$0xff] %v42_v6 }
  0x34   :  { %45 = vst [vmem:[#allocation7 + $0x8] sm:$0xff] %v43_v7 }
  0x35   :  { %124 = shalt.err (!%p121_p6)
}
  0x36   :  { %s125_s8 = scalar_lea.hbm %s197_s2, 256 }
  0x37   :  { %p126_p7 = scmp.ne.s32.totalorder %s197_s2, %s125_s8  ;;  %p129_p8 = scmp.lt.u32.totalorder %s125_s8, %s197_s2 }
  0x39   :  { %p131_p9 = pnand %p129_p8, %p126_p7 }
  0x3b   :  { %134 = shalt.err (!%p131_p9)
}
  0x3c   :  { %55 = dma.vmem_to_hbm [thread:$0]  %s53_s5, 256, %s197_s2, [#allocation4]  }
  0x3d   :  { %139 = dma.done.wait [#allocation4], 256  }
  0x3e   :  { %140 = vsyncadd [#allocation4], 4294967040 }
  0x3f   :  { %59 = vsyncpa [#allocation3], 1 }
  0x40   :  { %60 = vsyncpa [#allocation6], 1 }
  0x41   :  { %61 = vsyncpa [#allocation4], 1 }

</bundles_post_ra>
